<compile_context>
chip_gen: v5e
topology: v5e:2x2
jax: 0.10.0
libtpu: 0.0.40
codegen_flags: <defaults>
</compile_context>

<pallas_src>
import functools

import jax
import jax.numpy as jnp
from jax import lax
from jax.experimental import pallas as pl
from jax.experimental.pallas import tpu as pltpu


def _ffn_hidden_dim(dim: int, hidden_dim: int, multiple_of: int,
                    ffn_dim_multiplier=None) -> int:
    # Mirrors FeedForward.__init__ hidden_dim arithmetic exactly.
    hidden_dim = int(2 * hidden_dim / 3)
    if ffn_dim_multiplier is not None:
        hidden_dim = int(ffn_dim_multiplier * hidden_dim)
    hidden_dim = multiple_of * ((hidden_dim + multiple_of - 1) // multiple_of)
    return hidden_dim


def _round_up(x: int, m: int) -> int:
    return ((x + m - 1) // m) * m


def _largest_divisor_tile(total: int, preferred: int, step: int) -> int:
    """Largest multiple of `step` dividing `total` and <= preferred; 0 if none."""
    t = (min(preferred, total) // step) * step
    while t >= step:
        if total % t == 0:
            return t
        t -= step
    return 0


def _detect_tpu():
    kind = ""
    try:
        kind = jax.devices()[0].device_kind.lower()
    except Exception:
        pass
    vmem_cap = None
    try:
        vmem_cap = int(pltpu.get_tpu_info().vmem_capacity_bytes)
    except Exception:
        vmem_cap = None
    if vmem_cap is None or vmem_cap <= 0:
        vmem_cap = 64 * 1024 * 1024  # conservative per-TC default (v7x)
    return kind, vmem_cap


def _default_tiles(kind: str, vmem_cap: int):
    if vmem_cap <= 80 * 1024 * 1024:
        # v7x: 64 MiB VMEM per TC -> compute-bound tile pair that still fits.
        return 768, 256
    if "v5e" in kind or "v5 lite" in kind or "v5lite" in kind:
        # v5e roofline (~240 FLOP/B) already met at tm=512; spend VMEM on th.
        return 512, 1024
    # v6e / other 128 MiB chips: big token tile to cross weight-stream roofline.
    return 1024, 1024


def _vmem_estimate(tm, th, dim, wb, ob, acc_bytes):
    return (2 * tm * dim * wb          # x tile (double-buffered)
            + 2 * 2 * th * dim * wb    # w1 + w3 tiles
            + 2 * dim * th * wb        # w2 tile
            + 2 * tm * dim * ob        # output tile
            + acc_bytes)               # f32 accumulator scratch (0 if out f32)


def _ffn_body(x_ref, w1_ref, w3_ref, w2_ref, o_ref, acc_ref, write_out):
    # x_ref:   (tm, dim)   bf16 token tile (resident across the hidden sweep)
    # w1_ref:  (th, dim)   w1 tile, native PyTorch (out, in) layout
    # w3_ref:  (th, dim)   w3 tile
    # w2_ref:  (dim, th)   w2 tile
    # o_ref:   (tm, dim)   output tile (resident across the hidden sweep)
    # acc_ref: (tm, dim)   f32 accumulator (== o_ref when out dtype is f32)
    h = pl.program_id(1)
    x = x_ref[...]

    # Contract the last ("in") dim of both operands: x @ w.T, no HBM transpose.
    dn_t = (((1,), (1,)), ((), ()))
    h1 = lax.dot_general(x, w1_ref[...], dn_t,
                         preferred_element_type=jnp.float32)
    h3 = lax.dot_general(x, w3_ref[...], dn_t,
                         preferred_element_type=jnp.float32)
    # SiLU gate: sigmoid goes to the EUP, multiplies to the VPU.
    g = (h1 * jax.nn.sigmoid(h1)) * h3

    partial = lax.dot_general(g.astype(w2_ref.dtype), w2_ref[...], dn_t,
                              preferred_element_type=jnp.float32)

    @pl.when(h == 0)
    def _init():
        acc_ref[...] = partial.astype(acc_ref.dtype)

    @pl.when(h != 0)
    def _accum():
        acc_ref[...] += partial.astype(acc_ref.dtype)

    if write_out:
        @pl.when(h == pl.num_programs(1) - 1)
        def _finalize():
            o_ref[...] = acc_ref[...].astype(o_ref.dtype)


def _make_kernel(acc_into_out: bool):
    if acc_into_out:
        # Output dtype is f32: accumulate directly into the resident output
        # block; no scratch needed (saves tm*dim*4 bytes of VMEM on v7x).
        def kernel(x_ref, w1_ref, w3_ref, w2_ref, o_ref):
            _ffn_body(x_ref, w1_ref, w3_ref, w2_ref, o_ref, o_ref,
                      write_out=False)
    else:
        def kernel(x_ref, w1_ref, w3_ref, w2_ref, o_ref, acc_ref):
            _ffn_body(x_ref, w1_ref, w3_ref, w2_ref, o_ref, acc_ref,
                      write_out=True)
    return kernel


@functools.partial(jax.jit, static_argnames=("tm", "th"))
def feed_forward(x, w1, w2, w3, *, tm=None, th=None):
    """SwiGLU FFN: w2(silu(w1(x)) * w3(x)).

    x: (B, S, dim). w1, w3: (hidden, dim). w2: (dim, hidden) — PyTorch Linear
    (out, in) layout. Pass the weights already in bf16 (cast once at model-load
    time); casting f32 weights per call re-materializes them in HBM.
    """
    B, S, dim = x.shape
    hidden = w1.shape[0]
    assert w3.shape == (hidden, dim)
    assert w2.shape == (dim, hidden)

    kind, vmem_cap = _detect_tpu()
    tm_d, th_d = _default_tiles(kind, vmem_cap)
    if tm is not None:
        tm_d = tm
    if th is not None:
        th_d = th

    compute_dtype = jnp.bfloat16
    out_dtype = x.dtype
    wb = jnp.dtype(compute_dtype).itemsize
    ob = jnp.dtype(out_dtype).itemsize
    acc_into_out = out_dtype == jnp.float32

    T = B * S
    # Token tile: multiple of 16 (bf16 sublane packing); clamp for tiny T.
    tm_eff = max(16, (min(tm_d, _round_up(T, 16)) // 16) * 16)
    # Hidden (reduction) tile: prefer a 128-multiple divisor of hidden;
    # otherwise cdiv-tile with zero-padded hidden (silu(0)*0 contributes 0).
    th_eff = _largest_divisor_tile(hidden, th_d, 128)
    if th_eff == 0:
        th_eff = min(_round_up(min(th_d, hidden), 128), _round_up(hidden, 128))

    # Shrink tiles until the working set fits the physical-VMEM budget.
    budget = int(0.85 * vmem_cap)
    while _vmem_estimate(tm_eff, th_eff, dim, wb, ob,
                         0 if acc_into_out else tm_eff * dim * 4) > budget:
        if th_eff > 256:
            cand = _largest_divisor_tile(hidden, th_eff - 128, 128)
            th_eff = cand if cand else max(128, (th_eff // 2 // 128) * 128)
        elif tm_eff > 64:
            tm_eff = max(64, (tm_eff // 2 // 16) * 16)
        else:
            break

    T_pad = _round_up(T, tm_eff)
    hidden_pad = _round_up(hidden, th_eff)

    x2d = x.reshape(T, dim).astype(compute_dtype)
    if T_pad != T:
        x2d = jnp.pad(x2d, ((0, T_pad - T), (0, 0)))

    # No-op if the caller already stores bf16 weights (recommended).
    w1c = w1 if w1.dtype == compute_dtype else w1.astype(compute_dtype)
    w3c = w3 if w3.dtype == compute_dtype else w3.astype(compute_dtype)
    w2c = w2 if w2.dtype == compute_dtype else w2.astype(compute_dtype)
    if hidden_pad != hidden:
        p = hidden_pad - hidden
        w1c = jnp.pad(w1c, ((0, p), (0, 0)))
        w3c = jnp.pad(w3c, ((0, p), (0, 0)))
        w2c = jnp.pad(w2c, ((0, 0), (0, p)))

    grid = (T_pad // tm_eff, hidden_pad // th_eff)

    est = _vmem_estimate(tm_eff, th_eff, dim, wb, ob,
                         0 if acc_into_out else tm_eff * dim * 4)
    vmem_limit = int(min(max(int(est * 1.3), 32 * 1024 * 1024), budget))

    flops = 6 * T_pad * dim * hidden_pad
    bytes_accessed = int(T_pad * dim * (wb + ob)
                         + grid[0] * 3 * dim * hidden_pad * wb)
    cost = pl.CostEstimate(flops=flops,
                           transcendentals=T_pad * hidden_pad,
                           bytes_accessed=bytes_accessed)

    scratch_shapes = ([] if acc_into_out
                      else [pltpu.VMEM((tm_eff, dim), jnp.float32)])

    out2d = pl.pallas_call(
        _make_kernel(acc_into_out),
        out_shape=jax.ShapeDtypeStruct((T_pad, dim), out_dtype),
        grid_spec=pltpu.PrefetchScalarGridSpec(
            num_scalar_prefetch=0,
            grid=grid,
            in_specs=[
                pl.BlockSpec((tm_eff, dim), lambda i, h: (i, 0)),   # x
                pl.BlockSpec((th_eff, dim), lambda i, h: (h, 0)),   # w1
                pl.BlockSpec((th_eff, dim), lambda i, h: (h, 0)),   # w3
                pl.BlockSpec((dim, th_eff), lambda i, h: (0, h)),   # w2
            ],
            out_specs=pl.BlockSpec((tm_eff, dim), lambda i, h: (i, 0)),
            scratch_shapes=scratch_shapes,
        ),
        compiler_params=pltpu.CompilerParams(
            dimension_semantics=("parallel", "arbitrary"),
            vmem_limit_bytes=vmem_limit,
        ),
        cost_estimate=cost,
    )(x2d, w1c, w3c, w2c)

    return out2d[:T].reshape(B, S, dim)


if __name__ == "__main__":
    # Small, module-consistent shapes.
    B, S = 2, 8
    dim = 128
    multiple_of = 256
    hidden = _ffn_hidden_dim(dim, 4 * dim, multiple_of, None)  # -> 512

    key = jax.random.PRNGKey(0)
    kx, k1, k2, k3 = jax.random.split(key, 4)
    x = jax.random.normal(kx, (B, S, dim), dtype=jnp.float32)
    # Weights in PyTorch Linear (out, in) layout, cast to bf16 ONCE here
    # (model-load time) — the kernel consumes them without a per-call cast.
    w1 = (jax.random.normal(k1, (hidden, dim), dtype=jnp.float32) * 0.02
          ).astype(jnp.bfloat16)
    w2 = (jax.random.normal(k2, (dim, hidden), dtype=jnp.float32) * 0.02
          ).astype(jnp.bfloat16)
    w3 = (jax.random.normal(k3, (hidden, dim), dtype=jnp.float32) * 0.02
          ).astype(jnp.bfloat16)

    out = feed_forward(x, w1, w2, w3)
    out = jax.block_until_ready(out)
    assert out.shape == (B, S, dim)

    # bf16-consistent pure-JAX reference of the same math.
    xb = x.astype(jnp.bfloat16)
    h1 = jnp.dot(xb, w1.T, preferred_element_type=jnp.float32)
    h3 = jnp.dot(xb, w3.T, preferred_element_type=jnp.float32)
    g = (h1 * jax.nn.sigmoid(h1) * h3).astype(jnp.bfloat16)
    ref = jnp.dot(g, w2.T, preferred_element_type=jnp.float32).astype(x.dtype)

    assert jnp.allclose(out, ref, atol=1e-2, rtol=1e-2), float(
        jnp.max(jnp.abs(out - ref)))

    print("KERNEL_OK")
</pallas_src>

<mosaic_0001>
module attributes {stable_mosaic.version = 11 : i64} {
  func.func @kernel(%arg0: i32, %arg1: i32, %arg2: memref<16x128xbf16, #tpu.memory_space<vmem>>, %arg3: memref<256x128xbf16, #tpu.memory_space<vmem>>, %arg4: memref<256x128xbf16, #tpu.memory_space<vmem>>, %arg5: memref<128x256xbf16, #tpu.memory_space<vmem>>, %arg6: memref<16x128xf32, #tpu.memory_space<vmem>>) attributes {dimension_semantics = [#tpu.dimension_semantics<parallel>, #tpu.dimension_semantics<arbitrary>], iteration_bounds = array<i64: 1, 2>, scalar_prefetch = 0 : i64, scratch_operands = 0 : i64, tpu.core_type = #tpu.core_type<tc>, window_params = [{transform_indices = @transform_0, window_bounds = array<i64: 16, 128>}, {transform_indices = @transform_1, window_bounds = array<i64: 256, 128>}, {transform_indices = @transform_2, window_bounds = array<i64: 256, 128>}, {transform_indices = @transform_3, window_bounds = array<i64: 128, 256>}, {transform_indices = @transform_4, window_bounds = array<i64: 16, 128>}]} {
    %c0 = arith.constant 0 : index
    %c0_0 = arith.constant 0 : index
    %0 = vector.load %arg2[%c0, %c0_0] : memref<16x128xbf16, #tpu.memory_space<vmem>>, vector<16x128xbf16>
    %c0_1 = arith.constant 0 : index
    %c0_2 = arith.constant 0 : index
    %1 = vector.load %arg3[%c0_1, %c0_2] : memref<256x128xbf16, #tpu.memory_space<vmem>>, vector<256x128xbf16>
    %cst = arith.constant dense<0.000000e+00> : vector<16x256xf32>
    %2 = tpu.matmul %0, %1, %cst {dimension_numbers = #tpu.dot_dimension_numbers<[1], [1], [0], [0], [0, 0, 1, 0], [], []>} : vector<16x128xbf16>, vector<256x128xbf16>, vector<16x256xf32> -> vector<16x256xf32>
    %c0_3 = arith.constant 0 : index
    %c0_4 = arith.constant 0 : index
    %3 = vector.load %arg4[%c0_3, %c0_4] : memref<256x128xbf16, #tpu.memory_space<vmem>>, vector<256x128xbf16>
    %cst_5 = arith.constant dense<0.000000e+00> : vector<16x256xf32>
    %4 = tpu.matmul %0, %3, %cst_5 {dimension_numbers = #tpu.dot_dimension_numbers<[1], [1], [0], [0], [0, 0, 1, 0], [], []>} : vector<16x128xbf16>, vector<256x128xbf16>, vector<16x256xf32> -> vector<16x256xf32>
    %5 = arith.negf %2 : vector<16x256xf32>
    %6 = math.exp %5 : vector<16x256xf32>
    %cst_6 = arith.constant 1.000000e+00 : f32
    %7 = vector.broadcast %cst_6 : f32 to vector<16x256xf32>
    %8 = arith.addf %7, %6 : vector<16x256xf32>
    %9 = arith.divf %7, %8 : vector<16x256xf32>
    %10 = arith.mulf %2, %9 : vector<16x256xf32>
    %11 = arith.mulf %10, %4 : vector<16x256xf32>
    %12 = arith.truncf %11 : vector<16x256xf32> to vector<16x256xbf16>
    %c0_7 = arith.constant 0 : index
    %c0_8 = arith.constant 0 : index
    %13 = vector.load %arg5[%c0_7, %c0_8] : memref<128x256xbf16, #tpu.memory_space<vmem>>, vector<128x256xbf16>
    %cst_9 = arith.constant dense<0.000000e+00> : vector<16x128xf32>
    %14 = tpu.matmul %12, %13, %cst_9 {dimension_numbers = #tpu.dot_dimension_numbers<[1], [1], [0], [0], [0, 0, 1, 0], [], []>} : vector<16x256xbf16>, vector<128x256xbf16>, vector<16x128xf32> -> vector<16x128xf32>
    %c0_i32 = arith.constant 0 : i32
    %15 = arith.cmpi eq, %arg1, %c0_i32 : i32
    %16 = arith.extui %15 : i1 to i32
    %c0_i32_10 = arith.constant 0 : i32
    %17 = arith.cmpi ne, %16, %c0_i32_10 : i32
    scf.if %17 {
      %c0_13 = arith.constant 0 : index
      %c0_14 = arith.constant 0 : index
      %21 = vector.load %arg6[%c0_13, %c0_14] : memref<16x128xf32, #tpu.memory_space<vmem>>, vector<16x128xf32>
      tpu.vector_store %arg6[%c0_13, %c0_14], %14 {strides = array<i32>} : memref<16x128xf32, #tpu.memory_space<vmem>>, vector<16x128xf32>,
    } else {
    }
    %c0_i32_11 = arith.constant 0 : i32
    %18 = arith.cmpi ne, %arg1, %c0_i32_11 : i32
    %19 = arith.extui %18 : i1 to i32
    %c0_i32_12 = arith.constant 0 : i32
    %20 = arith.cmpi ne, %19, %c0_i32_12 : i32
    scf.if %20 {
      %c0_13 = arith.constant 0 : index
      %c0_14 = arith.constant 0 : index
      %21 = vector.load %arg6[%c0_13, %c0_14] : memref<16x128xf32, #tpu.memory_space<vmem>>, vector<16x128xf32>
      %22 = arith.addf %21, %14 : vector<16x128xf32>
      %c0_15 = arith.constant 0 : index
      %c0_16 = arith.constant 0 : index
      %23 = vector.load %arg6[%c0_15, %c0_16] : memref<16x128xf32, #tpu.memory_space<vmem>>, vector<16x128xf32>
      tpu.vector_store %arg6[%c0_15, %c0_16], %22 {strides = array<i32>} : memref<16x128xf32, #tpu.memory_space<vmem>>, vector<16x128xf32>,
    } else {
    }
    return
  }
  func.func @transform_0(%arg0: i32, %arg1: i32) -> (i32, i32) {
    %c0_i32 = arith.constant 0 : i32
    %c0_i32_0 = arith.constant 0 : i32
    return %arg0, %c0_i32 : i32, i32
  }
  func.func @transform_1(%arg0: i32, %arg1: i32) -> (i32, i32) {
    %c0_i32 = arith.constant 0 : i32
    %c0_i32_0 = arith.constant 0 : i32
    return %arg1, %c0_i32 : i32, i32
  }
  func.func @transform_2(%arg0: i32, %arg1: i32) -> (i32, i32) {
    %c0_i32 = arith.constant 0 : i32
    %c0_i32_0 = arith.constant 0 : i32
    return %arg1, %c0_i32 : i32, i32
  }
  func.func @transform_3(%arg0: i32, %arg1: i32) -> (i32, i32) {
    %c0_i32 = arith.constant 0 : i32
    %c0_i32_0 = arith.constant 0 : i32
    return %c0_i32, %arg1 : i32, i32
  }
  func.func @transform_4(%arg0: i32, %arg1: i32) -> (i32, i32) {
    %c0_i32 = arith.constant 0 : i32
    %c0_i32_0 = arith.constant 0 : i32
    return %arg0, %c0_i32 : i32, i32
  }
}

</mosaic_0001>

<bundles_post_ra>
// kernel: feed_forward.1
= control target key start
LH: loop header
LB: loop body
LE: loop exit
PB: predicated region body
PF: predicated region fallthrough
CT: control target
= control target key end

     0   :  { %s1815_s0 = inlined_call_operand.vmem [shape: bf16[16,128], index: 0, kind: input, shape index: {}]   ;;  %s1816_s1 = inlined_call_operand.hbm [shape: bf16[512,128], index: 1, kind: input, shape index: {}]   ;;  %s1817_s2 = inlined_call_operand.hbm [shape: bf16[512,128], index: 2, kind: input, shape index: {}]   ;;  %s1818_s3 = inlined_call_operand.hbm [shape: bf16[128,512], index: 3, kind: input, shape index: {}]   ;;  %s1819_s4 = inlined_call_operand.hbm [shape: f32[16,128], index: 4, kind: output, shape index: {}]  }
   0x1   :  { %1823 = sst [smem:[#allocation16_spill]] %s1817_s2 }
   0x2   :  { %9 = vsyncpa [#allocation3], 0 }
   0x3   :  { %11 = vsyncpa [#allocation3 + $0x1], 0 }
   0x4   :  { %12 = vsyncpa [#allocation6], 0 }
   0x5   :  { %14 = vsyncpa [#allocation6 + $0x1], 0 }
   0x6   :  { %15 = vsyncpa [#allocation4], 0  ;;  %s1590_s15 = smov 0   ;;  %s1592_s16 = smov 0  }
   0x7   :  { %s1594_s17 = smov 0   ;;  %s1596_s18 = smov 0  }
   0x8   :  { %s1598_s19 = smov 0   ;;  %s1600_s20 = smov 0  }
   0x9 LB: > { %1824 = sst [smem:[#allocation12_spill]] %s1543_s17  ;;  %s1619_s21 = sadd.s32 4294967295, %s1555_s20   ;;  %s1555_s20 = sphi %s1600_s20, %s21_s20   ;;  %s1551_s19 = sphi %s1598_s19, %s1843_s19   ;;  %s1547_s18 = sphi %s1596_s18, %s1842_s18   ;;  %s1543_s17 = sphi %s1594_s17, %s1838_s17   ;;  %s1539_s16 = sphi %s1592_s16, %s1841_s16   ;;  %s1535_s15 = sphi %s1590_s15, %s1840_s15  }
   0xa   : > { %1825 = sst [smem:[#allocation13_spill]] %s1555_s20  ;;  %s30_s22 = sadd.s32 1, %s1551_s19 }
   0xb   : > { %p31_p0 = scmp.ge.s32.totalorder %s30_s22, 2  ;;  %s66_s23 = sadd.s32 1, %s1543_s17 }
   0xc   : > { %p73_p1 = scmp.ne.s32.totalorder %s1543_s17, %s1539_s16  ;;  %p74_p2 = scmp.eq.s32.totalorder %s1555_s20, 0 }
   0xd   : > { %s1845_s22 = smov (%p31_p0, %s30_s22), 0  ;;  %p79_p4 = scmp.ne.s32.totalorder %s1539_s16, %s1535_s15 }
   0xe   : > { %1826 = sst [smem:[#allocation14_spill]] %s1845_s22  ;;  %p75_p3 = por %p74_p2, %p73_p1 }
   0xf   : > { %s63_s24 = ssub.s32 %s1551_s19, %s1845_s22  ;;  %p80_p5 = scmp.eq.s32.totalorder %s1619_s21, 0 }
  0x10   : > { %p64_p6 = scmp.eq.s32.totalorder %s63_s24, 0  ;;  %p1304_p8 = scmp.lt.s32.totalorder %s1555_s20, 2 }
  0x11   : > { %p1632_p7 = por %p80_p5, %p79_p4  ;;  %s190_s27 = sand.u32 1, %s1543_s17  }
  0x12   : > { %s1638_s26 = scalar_select %p64_p6, %s1543_s17, %s66_s23  }
  0x13   : > { %s1232_s28 = sshll.u32 %s1551_s19, 7  ;;  %s1013_s29 = sshll.u32 %s190_s27, 7 }
  0x14   : > { %1828 = sst [smem:[#allocation15_spill]] %s1638_s26  ;;  %p1642_p9 = pnand %p1304_p8, %p75_p3 }
  0x15   : > { %s212_s5 = sand.u32 1, %s1555_s20   ;;  %s1830_s2 = sld [smem:[#allocation16_spill]] }
  0x16   : > { %s216_s9 = scalar_lea.vmem [#allocation5], %s1013_s29  ;;  %s1650_s12 = scalar_lea.sflag [#allocation6], %s212_s5 }
  0x17   : > { %s224_s10 = sshll.u32 %s216_s9, 4  ;;  %s1557_s13 = smov 64   ;;  %s225_s10 = int_to_ptr.vmem [resolvable:$true] %s224_s10 }
  0x18   : > { %s1558_s14 = smov 4   ;;  %s238_s15 = scalar_lea.vmem [#allocation7], %s1013_s29 }
  0x19   : > { %s246_s23 = sshll.u32 %s238_s15, 4  ;;  %p1022_p10 = scmp.ge.s32.totalorder %s1555_s20, 1  ;;  %s247_s23 = int_to_ptr.vmem [resolvable:$true] %s246_s23 }
  0x1a   : > { %p254_p11 = scmp.lt.s32.totalorder %s1555_s20, 3  ;;  %s199_s5 = scalar_lea.hbm %s1816_s1, %s1232_s28 }
  0x1b   : > { %s221_s8 = scalar_lea.hbm %s1830_s2, %s1232_s28  ;;  %s194_s9 = scalar_lea.vmem [#allocation2], %s1013_s29 }
  0x1c   : > { %s222_s11 = sshll.u32 %s221_s8, 4  ;;  %p1657_p12 = pnand %p1022_p10, %p254_p11  ;;  %s223_s11 = int_to_ptr.hbm [resolvable:$true] %s222_s11 }
  0x1d   : > { %1300 = dma.hbm_to_vmem [thread:$0]  (!%p1642_p9), %s223_s11, 2048, %s225_s10, %s1650_s12, %s1557_s13, %s1557_s13, %s1558_s14  }
  0x1e   : > { %s200_s8 = sshll.u32 %s199_s5, 4  ;;  %s202_s2 = sshll.u32 %s194_s9, 4  ;;  %s201_s8 = int_to_ptr.hbm [resolvable:$true] %s200_s8  ;;  %s203_s2 = int_to_ptr.vmem [resolvable:$true] %s202_s2 }
  0x1f   : > { %s191_s10 = scalar_lea.sflag [#allocation3], %s190_s27  ;;  %s1234_s11 = sshll.u32 %s1551_s19, 3 }
  0x20   : > { %1297 = dma.hbm_to_vmem [thread:$0]  (!%p1642_p9), %s201_s8, 2048, %s203_s2, %s191_s10, %s1557_s13, %s1557_s13, %s1558_s14  }
  0x21   : > { %s243_s26 = scalar_lea.hbm %s1818_s3, %s1234_s11  ;;  %s1559_s20 = smov 256  }
  0x22   : > { %s244_s17 = sshll.u32 %s243_s26, 4  ;;  %s1560_s6 = smov 128   ;;  %s245_s17 = int_to_ptr.hbm [resolvable:$true] %s244_s17 }
  0x23   : > { %s1561_s7 = smov 8   ;;  %258 = sbr.rel (%p1657_p12) target bundleno = 434 (0x1b2), region = 36 }
  0x24   : > { %1303 = dma.hbm_to_vmem [thread:$0]  (!%p1642_p9), %s245_s17, 2048, %s247_s23, %s1650_s12, %s1559_s20, %s1560_s6, %s1561_s7  }
  0x25   : > { %s260_s27 = sand.u32 (!%p1657_p12), 1, %s1539_s16  }
  0x26   : > { %s1676_s28 = sshll.u32 (!%p1657_p12), %s260_s27, 7  ;;  %s261_s2 = scalar_lea.sflag (!%p1657_p12), [#allocation3], %s260_s27 }
  0x27   : > { %s1679_s29 = scalar_lea.vmem (!%p1657_p12), [#allocation2], %s1676_s28 }
  0x28   : > { %1522 = dma.done.wait (%p1632_p7), %s261_s2, 2048  }
  0x29   : > { %1524 = vsyncadd (%p1632_p7), %s261_s2, 4294965248  ;;  %s270_s17 = sand.u32 1, %s1619_s21   ;;  %s1687_s22 = scalar_lea.vmem [#allocation5], %s1676_s28 }
  0x2a   : > { %s271_s20 = scalar_lea.sflag [#allocation6], %s270_s17 }
  0x2b   : > { %1526 = dma.done.wait (%p1632_p7), %s271_s20, 4096  }
  0x2c   : > { %1528 = vsyncadd (%p1632_p7), %s271_s20, 4294963200  ;;  %v1243_v0 = vld [vmem:[%s1679_s29 + $0x38] sm:$0xff]  ;;  %v1242_v4 = vld [vmem:[%s1679_s29 + $0x30] sm:$0xff]  ;;  %s1722_s25 = scalar_lea.vmem [#allocation7], %s1676_s28  ;;  %p1226_p13 = scmp.ne.s32.totalorder %s1547_s18, 0 }
  0x2d   : > { %v1251_v1 = vld [vmem:[%s1679_s29 + $0x78] sm:$0xff]  ;;  %466 = vmatpush.bf16.xpose.msra.mxu0 %v1243_v0  ;;  %v1250_v5 = vld [vmem:[%s1679_s29 + $0x70] sm:$0xff]  ;;  %v1241_v8 = vld [vmem:[%s1679_s29 + $0x28] sm:$0xff] }
  0x2e   : > { %480 = vmatpush.bf16.xpose.msra.mxu1 %v1251_v1  ;;  %v1259_v2 = vld [vmem:[%s1687_s22 + $0x38] sm:$0xff]  ;;  %v1258_v6 = vld [vmem:[%s1687_s22 + $0x30] sm:$0xff]  ;;  %v1249_v9 = vld [vmem:[%s1679_s29 + $0x68] sm:$0xff] }
  0x2f   : > { %v1267_v3 = vld [vmem:[%s1687_s22 + $0x78] sm:$0xff]  ;;  %622 = vmatpush.bf16.xpose.msra.mxu2 %v1259_v2  ;;  %v1266_v7 = vld [vmem:[%s1687_s22 + $0x70] sm:$0xff]  ;;  %v1257_v10 = vld [vmem:[%s1687_s22 + $0x28] sm:$0xff] }
  0x30   : > { %636 = vmatpush.bf16.xpose.msra.mxu3 %v1267_v3  ;;  %v1265_v11 = vld [vmem:[%s1687_s22 + $0x68] sm:$0xff]  ;;  %v1240_v12 = vld [vmem:[%s1679_s29 + $0x20] sm:$0xff]  ;;  %v1239_v16 = vld [vmem:[%s1679_s29 + $0x18] sm:$0xff] }
  0x31   : > { %v1248_v13 = vld [vmem:[%s1679_s29 + $0x60] sm:$0xff]  ;;  %v1247_v17 = vld [vmem:[%s1679_s29 + $0x58] sm:$0xff]  ;;  %v1238_v20 = vld [vmem:[%s1679_s29 + $0x10] sm:$0xff] }
  0x32   : > { %v1256_v14 = vld [vmem:[%s1687_s22 + $0x20] sm:$0xff]  ;;  %v1255_v18 = vld [vmem:[%s1687_s22 + $0x18] sm:$0xff]  ;;  %v1246_v21 = vld [vmem:[%s1679_s29 + $0x50] sm:$0xff] }
  0x33   : > { %v1264_v15 = vld [vmem:[%s1687_s22 + $0x60] sm:$0xff]  ;;  %v1263_v19 = vld [vmem:[%s1687_s22 + $0x58] sm:$0xff]  ;;  %v1254_v22 = vld [vmem:[%s1687_s22 + $0x10] sm:$0xff] }
  0x34   : > { %v1262_v23 = vld [vmem:[%s1687_s22 + $0x50] sm:$0xff]  ;;  %v1237_v24 = vld [vmem:[%s1679_s29 + $0x8] sm:$0xff]  ;;  %v1283_v29 = vld [vmem:[%s1722_s25 + $0x74] sm:$0xf0] }
  0x35   : > { %467 = vmatpush.bf16.xpose.msra.mxu0 %v1242_v4  ;;  %v1245_v25 = vld [vmem:[%s1679_s29 + $0x48] sm:$0xff]  ;;  %v1220_v28 = vld [vmem:[%s1722_s25 + $0x70] sm:$0xf]  ;;  %v1282_v30 = vld [vmem:[%s1722_s25 + $0x74] sm:$0xf] }
  0x36   : > { %481 = vmatpush.bf16.xpose.msra.mxu1 %v1250_v5  ;;  %v1253_v26 = vld [vmem:[%s1687_s22 + $0x8] sm:$0xff]  ;;  %v1222_v31 = vld [vmem:[%s1722_s25 + $0x78] sm:$0xf0]  ;;  %v1236_v32 = vld [vmem:[%s1679_s29] sm:$0xff]  ;;  %v1221_v34 = vor.u32 %v1283_v29, %v1220_v28 }
  0x37   : > { %623 = vmatpush.bf16.xpose.msra.mxu2 %v1258_v6  ;;  %v1261_v27 = vld [vmem:[%s1687_s22 + $0x48] sm:$0xff]  ;;  %v1244_v33 = vld [vmem:[%s1679_s29 + $0x40] sm:$0xff]  ;;  %v1225_v35 = vor.u32 %v1282_v30, %v1222_v31  ;;  %v1204_v45 = vld [vmem:[%s1722_s25 + $0x50] sm:$0xf] }
  0x38   : > { %637 = vmatpush.bf16.xpose.msra.mxu3 %v1266_v7  ;;  %v1252_v36 = vld [vmem:[%s1687_s22] sm:$0xff]  ;;  %v1281_v40 = vld [vmem:[%s1722_s25 + $0x64] sm:$0xf0]  ;;  %v1214_v42 = vld [vmem:[%s1722_s25 + $0x68] sm:$0xf0] }
  0x39   : > { %v1260_v37 = vld [vmem:[%s1687_s22 + $0x40] sm:$0xff]  ;;  %v1279_v46 = vld [vmem:[%s1722_s25 + $0x54] sm:$0xf0]  ;;  %v1278_v47 = vld [vmem:[%s1722_s25 + $0x54] sm:$0xf] }
  0x3a   : > { %v1235_v38 = vld [vmem:[%s1815_s0] sm:$0xff]  ;;  %v1206_v48 = vld [vmem:[%s1722_s25 + $0x58] sm:$0xf0]  ;;  %v1205_v49 = vor.u32 %v1279_v46, %v1204_v45  ;;  %v1277_v52 = vld [vmem:[%s1722_s25 + $0x44] sm:$0xf0] }
  0x3b   : > { %v1212_v39 = vld [vmem:[%s1722_s25 + $0x60] sm:$0xf]  ;;  %v1280_v41 = vld [vmem:[%s1722_s25 + $0x64] sm:$0xf]  ;;  %v1209_v50 = vor.u32 %v1278_v47, %v1206_v48  ;;  %v1198_v55 = vld [vmem:[%s1722_s25 + $0x48] sm:$0xf0] }
  0x3c   : > { %v1213_v43 = vor.u32 %v1281_v40, %v1212_v39  ;;  %v1217_v44 = vor.u32 %v1280_v41, %v1214_v42  ;;  %v1196_v51 = vld [vmem:[%s1722_s25 + $0x40] sm:$0xf]  ;;  %v1276_v53 = vld [vmem:[%s1722_s25 + $0x44] sm:$0xf]  ;;  %v1188_v57 = vld [vmem:[%s1722_s25 + $0x30] sm:$0xf] }
  0x3d   : > { %468 = vmatpush.bf16.xpose.msra.mxu0 %v1241_v8  ;;  %v1197_v54 = vor.u32 %v1277_v52, %v1196_v51  ;;  %v1201_v56 = vor.u32 %v1276_v53, %v1198_v55  ;;  %v1275_v58 = vld [vmem:[%s1722_s25 + $0x34] sm:$0xf0]  ;;  %v1274_v59 = vld [vmem:[%s1722_s25 + $0x34] sm:$0xf]  ;;  %v1190_v61 = vld [vmem:[%s1722_s25 + $0x38] sm:$0xf0] }
  0x3e   : > { %482 = vmatpush.bf16.xpose.msra.mxu1 %v1249_v9  ;;  %v1189_v60 = vor.u32 %v1275_v58, %v1188_v57  ;;  %v1193_v62 = vor.u32 %v1274_v59, %v1190_v61  ;;  %v1180_v63 = vld [vmem:[%s1722_s25 + $0x20] sm:$0xf]  ;;  %v1273_v0 = vld [vmem:[%s1722_s25 + $0x24] sm:$0xf0]  ;;  %v1272_v1 = vld [vmem:[%s1722_s25 + $0x24] sm:$0xf] }
  0x3f   : > { %624 = vmatpush.bf16.xpose.msra.mxu2 %v1257_v10  ;;  %v1181_v2 = vor.u32 %v1273_v0, %v1180_v63  ;;  %v1182_v3 = vld [vmem:[%s1722_s25 + $0x28] sm:$0xf0]  ;;  %v1172_v5 = vld [vmem:[%s1722_s25 + $0x10] sm:$0xf]  ;;  %v1271_v6 = vld [vmem:[%s1722_s25 + $0x14] sm:$0xf0] }
  0x40   : > { %638 = vmatpush.bf16.xpose.msra.mxu3 %v1265_v11  ;;  %v1185_v4 = vor.u32 %v1272_v1, %v1182_v3  ;;  %v1270_v7 = vld [vmem:[%s1722_s25 + $0x14] sm:$0xf]  ;;  %v1173_v8 = vor.u32 %v1271_v6, %v1172_v5  ;;  %v1174_v9 = vld [vmem:[%s1722_s25 + $0x18] sm:$0xf0] }
  0x41   : > { %v1177_v10 = vor.u32 %v1270_v7, %v1174_v9 }
  0x45   : > { %469 = vmatpush.bf16.xpose.msra.mxu0 %v1240_v12 }
  0x46   : > { %483 = vmatpush.bf16.xpose.msra.mxu1 %v1248_v13 }
  0x47   : > { %625 = vmatpush.bf16.xpose.msra.mxu2 %v1256_v14 }
  0x48   : > { %639 = vmatpush.bf16.xpose.msra.mxu3 %v1264_v15  ;;  %v1164_v15 = vld [vmem:[%s1722_s25] sm:$0xf] }
  0x4d   : > { %470 = vmatpush.bf16.xpose.msra.mxu0 %v1239_v16  ;;  %v1269_v16 = vld [vmem:[%s1722_s25 + $0x4] sm:$0xf0] }
  0x4e   : > { %484 = vmatpush.bf16.xpose.msra.mxu1 %v1247_v17  ;;  %v1268_v17 = vld [vmem:[%s1722_s25 + $0x4] sm:$0xf] }
  0x4f   : > { %626 = vmatpush.bf16.xpose.msra.mxu2 %v1255_v18  ;;  %v1165_v18 = vor.u32 %v1269_v16, %v1164_v15 }
  0x50   : > { %640 = vmatpush.bf16.xpose.msra.mxu3 %v1263_v19  ;;  %v1166_v19 = vld [vmem:[%s1722_s25 + $0x8] sm:$0xf0] }
  0x55   : > { %471 = vmatpush.bf16.xpose.msra.mxu0 %v1238_v20  ;;  %v1169_v20 = vor.u32 %v1268_v17, %v1166_v19 }
  0x56   : > { %485 = vmatpush.bf16.xpose.msra.mxu1 %v1246_v21 }
  0x57   : > { %627 = vmatpush.bf16.xpose.msra.mxu2 %v1254_v22 }
  0x58   : > { %641 = vmatpush.bf16.xpose.msra.mxu3 %v1262_v23 }
  0x5d   : > { %472 = vmatpush.bf16.xpose.msra.mxu0 %v1237_v24 }
  0x5e   : > { %486 = vmatpush.bf16.xpose.msra.mxu1 %v1245_v25 }
  0x5f   : > { %628 = vmatpush.bf16.xpose.msra.mxu2 %v1253_v26 }
  0x60   : > { %642 = vmatpush.bf16.xpose.msra.mxu3 %v1261_v27 }
  0x65   : > { %473 = vmatpush.bf16.xpose.msra.mxu0 %v1236_v32 }
  0x66   : > { %487 = vmatpush.bf16.xpose.msra.mxu1 %v1244_v33 }
  0x67   : > { %629 = vmatpush.bf16.xpose.msra.mxu2 %v1252_v36 }
  0x68   : > { %643 = vmatpush.bf16.xpose.msra.mxu3 %v1260_v37 }
  0x6c   : > { %474 = vmatmul.bf16.vlgmr.msra.gmra.mxu0 %v1235_v38 }
  0x6d   : > { %832 = vmatpush.bf16.xpose.msrb.mxu0 %v1221_v34  ;;  %488 = vmatmul.bf16.vlgmr.msra.gmra.mxu1 %v1235_v38 }
  0x6e   : > { %846 = vmatpush.bf16.xpose.msrb.mxu1 %v1225_v35  ;;  %630 = vmatmul.bf16.vlgmr.msra.gmra.mxu2 %v1235_v38 }
  0x6f   : > { %644 = vmatmul.bf16.vlgmr.msra.gmra.mxu3 %v1235_v38 }
  0x75   : > { %833 = vmatpush.bf16.xpose.msrb.mxu0 %v1213_v43 }
  0x76   : > { %847 = vmatpush.bf16.xpose.msrb.mxu1 %v1217_v44 }
  0x7d   : > { %834 = vmatpush.bf16.xpose.msrb.mxu0 %v1205_v49 }
  0x7e   : > { %848 = vmatpush.bf16.xpose.msrb.mxu1 %v1209_v50 }
  0x85   : > { %835 = vmatpush.bf16.xpose.msrb.mxu0 %v1197_v54 }
  0x86   : > { %849 = vmatpush.bf16.xpose.msrb.mxu1 %v1201_v56 }
  0x8d   : > { %836 = vmatpush.bf16.xpose.msrb.mxu0 %v1189_v60 }
  0x8e   : > { %850 = vmatpush.bf16.xpose.msrb.mxu1 %v1193_v62 }
  0x95   : > { %837 = vmatpush.bf16.xpose.msrb.mxu0 %v1181_v2 }
  0x96   : > { %851 = vmatpush.bf16.xpose.msrb.mxu1 %v1185_v4 }
  0x9d   : > { %838 = vmatpush.bf16.xpose.msrb.mxu0 %v1173_v8 }
  0x9e   : > { %852 = vmatpush.bf16.xpose.msrb.mxu1 %v1177_v10 }
  0xa5   : > { %839 = vmatpush.bf16.xpose.msrb.mxu0 %v1165_v18 }
  0xa6   : > { %853 = vmatpush.bf16.xpose.msrb.mxu1 %v1169_v20 }
  0xe9   : > { %v1759_v11 = vpop.f32.mrf.mxu0 }
  0xea   : > { %v1761_v12 = vpop.f32.mrf.mxu1  ;;  %v1158_v13 = vmul.f32 -1.442695, %v1759_v11 }
  0xeb   : > { %v1159_v14 = vmul.f32 -1.442695, %v1761_v12 }
  0xec   : > { %1363 = vpow2.f32 %v1158_v13 }
  0xed   : > { %1365 = vpow2.f32 %v1159_v14 }
  0xf1   : > { %v1769_v21 = vpop.f32.mrf.mxu0  ;;  %v631_v49 = vpop.f32.mrf.mxu2 }
  0xf2   : > { %v1771_v22 = vpop.f32.mrf.mxu1  ;;  %v1364_v23 = vpop.eup %1363  ;;  %v1160_v24 = vmul.f32 -1.442695, %v1769_v21 }
  0xf3   : > { %v1366_v25 = vpop.eup %1365  ;;  %v662_v26 = vadd.f32 1.0, %v1364_v23  ;;  %v1161_v27 = vmul.f32 -1.442695, %v1771_v22  ;;  %v645_v60 = vpop.f32.mrf.mxu3 }
  0xf4   : > { %v663_v28 = vadd.f32 1.0, %v1366_v25  ;;  %1367 = vpow2.f32 %v1160_v24 }
  0xf5   : > { %1369 = vrcp.f32 %v662_v26  ;;  %v677_v43 = vand.u32 2147483648, %v662_v26  ;;  %vm671_vm1 = vweird.f32 %v662_v26  ;;  %v675_v44 = vand.u32 2147483647, %v662_v26 }
  0xf6   : > { %1371 = vrcp.f32 %v663_v28  ;;  %v690_v48 = vand.u32 2147483647, %v663_v28  ;;  %v692_v52 = vand.u32 2147483648, %v663_v28  ;;  %vm686_vm4 = vweird.f32 %v663_v28 }
  0xf7   : > { %1373 = vpow2.f32 %v1161_v27  ;;  %v678_v54 = vor.u32 1.1754944e-38, %v677_v43  ;;  %vm676_vm5 = vcmp.eq.f32.partialorder %v675_v44, 8.507059e+37 }
  0xf8   : > { %vm691_vm8 = vcmp.eq.f32.partialorder %v690_v48, 8.507059e+37  ;;  %v693_v0 = vor.u32 1.1754944e-38, %v692_v52 }
  0xf9   : > { %v633_v17 = vpop.f32.mrf.mxu2 }
  0xfa   : > { %v1368_v29 = vpop.eup %1367 }
  0xfb   : > { %v1370_v30 = vpop.eup %1369  ;;  %v664_v31 = vadd.f32 1.0, %v1368_v29  ;;  %v647_v24 = vpop.f32.mrf.mxu3 }
  0xfc   : > { %v1372_v32 = vpop.eup %1371  ;;  %v667_v33 = vmul.f32 %v1370_v30, %v662_v26  ;;  %vm672_vm0 = vweird.f32 %v1370_v30 }
  0xfd   : > { %v1374_v34 = vpop.eup %1373  ;;  %v682_v35 = vmul.f32 %v1372_v32, %v663_v28  ;;  %1375 = vrcp.f32 %v664_v31  ;;  %vm1775_vm2 = vmor %vm671_vm1, %vm672_vm0  ;;  %vm687_vm3 = vweird.f32 %v1372_v32  ;;  %v707_v55 = vand.u32 2147483648, %v664_v31 }
  0xfe   : > { %v668_v36 = vsub.f32 1.0, %v667_v33  ;;  %v665_v37 = vadd.f32 1.0, %v1374_v34  ;;  %vm1781_vm6 = vmor %vm686_vm4, %vm687_vm3  ;;  %v705_v59 = vand.u32 2147483647, %v664_v31  ;;  %vm701_vm9 = vweird.f32 %v664_v31 }
  0xff   : > { %v683_v38 = vsub.f32 1.0, %v682_v35  ;;  %v708_v3 = vor.u32 1.1754944e-38, %v707_v55 }
 0x100   : > { %v669_v39 = vmul.f32 %v1370_v30, %v668_v36  ;;  %1377 = vrcp.f32 %v665_v37  ;;  %v722_v2 = vand.u32 2147483648, %v665_v37  ;;  %v720_v5 = vand.u32 2147483647, %v665_v37 }
 0x101   : > { %v684_v40 = vmul.f32 %v1372_v32, %v683_v38  ;;  %vm706_vm12 = vcmp.eq.f32.partialorder %v705_v59, 8.507059e+37  ;;  %vm716_vm13 = vweird.f32 %v665_v37 }
 0x102   : > { %v670_v41 = vadd.f32 %v1370_v30, %v669_v39  ;;  %v723_v14 = vor.u32 1.1754944e-38, %v722_v2  ;;  %vm721_vm15 = vcmp.eq.f32.partialorder %v720_v5, 8.507059e+37 }
 0x103   : > { %v1376_v42 = vpop.eup %1375  ;;  %v685_v47 = vadd.f32 %v1372_v32, %v684_v40 }
 0x104   : > { %v697_v45 = vmul.f32 %v1376_v42, %v664_v31  ;;  %v674_v51 = vsel %vm1775_vm2, %v1370_v30, %v670_v41  ;;  %vm702_vm7 = vweird.f32 %v1376_v42 }
 0x105   : > { %v679_v61 = vsel %vm676_vm5, %v678_v54, %v674_v51  ;;  %v689_v62 = vsel %vm1781_vm6, %v1372_v32, %v685_v47  ;;  %vm703_vm10 = vmor %vm701_vm9, %vm702_vm7 }
 0x106   : > { %v1378_v50 = vpop.eup %1377  ;;  %v698_v53 = vsub.f32 1.0, %v697_v45  ;;  %v726_v6 = vmul.f32 %v679_v61, %v1759_v11  ;;  %v694_v7 = vsel %vm691_vm8, %v693_v0, %v689_v62 }
 0x107   : > { %v712_v56 = vmul.f32 %v1378_v50, %v665_v37  ;;  %vm717_vm11 = vweird.f32 %v1378_v50  ;;  %v727_v15 = vmul.f32 %v694_v7, %v1761_v12 }
 0x108   : > { %v699_v58 = vmul.f32 %v1376_v42, %v698_v53  ;;  %vm718_vm14 = vmor %vm716_vm13, %vm717_vm11  ;;  %v730_v19 = vmul.f32 %v726_v6, %v631_v49 }
 0x109   : > { %v713_v63 = vsub.f32 1.0, %v712_v56  ;;  %v731_v25 = vmul.f32 %v727_v15, %v645_v60 }
 0x10a   : > { %v700_v1 = vadd.f32 %v1376_v42, %v699_v58 }
 0x10b   : > { %v714_v4 = vmul.f32 %v1378_v50, %v713_v63 }
 0x10c   : > { %v704_v8 = vsel %vm703_vm10, %v1376_v42, %v700_v1 }
 0x10d   : > { %v709_v9 = vsel %vm706_vm12, %v708_v3, %v704_v8  ;;  %v715_v10 = vadd.f32 %v1378_v50, %v714_v4 }
 0x10e   : > { %v728_v13 = vmul.f32 %v709_v9, %v1769_v21 }
 0x10f   : > { %v719_v16 = vsel %vm718_vm14, %v1378_v50, %v715_v10 }
 0x110   : > { %v724_v18 = vsel %vm721_vm15, %v723_v14, %v719_v16  ;;  %v732_v20 = vmul.f32 %v728_v13, %v633_v17 }
 0x111   : > { %v729_v11 = vmul.f32 %v724_v18, %v1771_v22 }
 0x112   : > { %v734_v23 = vpack.c.bf16 %v732_v20, %v730_v19 }
 0x113   : > { %v733_v26 = vmul.f32 %v729_v11, %v647_v24 }
 0x114   : > { %840 = vmatmul.bf16.vlgmr.msrb.gmra.mxu0 %v734_v23 }
 0x115   : > { %v735_v27 = vpack.c.bf16 %v733_v26, %v731_v25 }
 0x117   : > { %854 = vmatmul.bf16.vlgmr.msrb.gmra.mxu1 %v735_v27 }
 0x191   : > { %v841_v21 = vpop.f32.mrf.mxu0 }
 0x194   : > { %v855_v28 = vpop.f32.mrf.mxu1 }
 0x195   : > { %v856_v29 = vadd.f32 %v855_v28, %v841_v21 }
 0x199   : > { %v843_v30 = vpop.f32.mrf.mxu0  ;;  %863 = sbr.rel (%p1226_p13) target bundleno = 416 (0x1a0), region = 52 }
 0x19c   : > { %v857_v12 = vpop.f32.mrf.mxu1 }
 0x19d   : > { %v858_v31 = vadd.f32 %v857_v12, %v843_v30 }
 0x19e   : > { %864 = vst [vmem:[#allocation8] sm:$0xff] %v856_v29 }
 0x19f   : > { %865 = vst [vmem:[#allocation8 + $0x8] sm:$0xff] %v858_v31 }
 0x1a0 PF: > { %p1227_p0 = scmp.eq.s32.totalorder %s1547_s18, 0 }
 0x1a2   : > { %869 = sbr.rel (%p1227_p0) target bundleno = 428 (0x1ac), region = 56 }
 0x1a7   : > { %v870_v22 = vld [vmem:[#allocation8] sm:$0xff]  ;;  %v871_v32 = vld [vmem:[#allocation8 + $0x8] sm:$0xff] }
 0x1a8   : > { %v872_v33 = vadd.f32 %v870_v22, %v856_v29  ;;  %v873_v34 = vadd.f32 %v871_v32, %v858_v31 }
 0x1aa   : > { %874 = vst [vmem:[#allocation8] sm:$0xff] %v872_v33 }
 0x1ab   : > { %875 = vst [vmem:[#allocation8 + $0x8] sm:$0xff] %v873_v34 }
 0x1ac PF: > { %p1305_p1 = scmp.eq.s32.totalorder %s1619_s21, 1  ;;  %s886_s14 = sshll.u32 %s1819_s4, 4  ;;  %s887_s14 = int_to_ptr.hbm [resolvable:$true] %s886_s14 }
 0x1ad   : > { %s1562_s23 = smov [#allocation8]   ;;  %s1563_s5 = smov 128  }
 0x1ae   : > { %s884_s24 = sshll.u32 %s1562_s23, 4  ;;  %s1564_s18 = smov 8   ;;  %s885_s24 = int_to_ptr.vmem [resolvable:$true] %s884_s24 }
 0x1af   : > { %1291 = dma.vmem_to_hbm [thread:$0]  (%p1305_p1), %s885_s24, 256, %s887_s14, [#allocation4], %s1563_s5, %s1563_s5, %s1564_s18  }
 0x1b0   : > { %1530 = dma.done.wait (%p1305_p1), [#allocation4], 256  }
 0x1b1   : > { %1532 = vsyncadd (%p1305_p1), [#allocation4], 4294967040 }
 0x1b2 PF: > { %s1836_s8 = sld [smem:[#allocation13_spill]]  ;;  %s1840_s15 = smov %s1539_s16 }
 0x1b3   : > { %s1837_s9 = sld [smem:[#allocation12_spill]]  ;;  %s1842_s18 = smov %s1551_s19 }
 0x1b4   : > { %s1838_s17 = sld [smem:[#allocation15_spill]] }
 0x1b5   : > { %s1839_s21 = sld [smem:[#allocation14_spill]] }
 0x1b8   : > { %s21_s20 = sadd.s32 1, %s1836_s8  }
 0x1b9   : > { %p18_p2 = scmp.ge.s32.totalorder %s21_s20, 4   ;;  %s1841_s16 = smov %s1837_s9 }
 0x1bb   : > { %s1843_s19 = smov %s1839_s21  ;;  %20 = sbr.rel (!%p18_p2) target bundleno = 9 (0x9), region = 109 }
 0x1c0   :  { %903 = vsyncpa [#allocation3], 1 }
 0x1c1   :  { %905 = vsyncpa [#allocation3 + $0x1], 1 }
 0x1c2   :  { %906 = vsyncpa [#allocation6], 1 }
 0x1c3   :  { %908 = vsyncpa [#allocation6 + $0x1], 1 }
 0x1c4   :  { %909 = vsyncpa [#allocation4], 1 }
 0x1c5   :  { %911 = vsyncpa [#allocation4 + $0x1], 1 }

</bundles_post_ra>
